<compile_context>
chip_gen: v6e
topology: v6e:2x2x1
jax: 0.10.0
libtpu: 0.0.40
codegen_flags: <defaults>
</compile_context>

<pallas_src>
import math

import jax
import jax.numpy as jnp
from jax.experimental import pallas as pl
from jax.experimental.pallas import tpu as pltpu


def _ceil_div(a, b):
    return -(-a // b)


# ----------------------------------------------------------------------------
# Kernel: one folded matmul per lane tile.
# ----------------------------------------------------------------------------
def fagcn_kernel(x_ref, w_ref, b_ref, o_ref):
    # x_ref: (C*V, TM)   lane-dense tile, columns are (n, l) samples
    # w_ref: (O*V, C*V)  folded FAGCN operator (resident across the grid)
    # b_ref: (O*V, 1)    per-(o,v)-row bias (f32, resident)
    # o_ref: (O*V, TM)
    acc = jnp.dot(w_ref[...], x_ref[...], preferred_element_type=jnp.float32)
    o_ref[...] = (acc + b_ref[...]).astype(o_ref.dtype)


# ----------------------------------------------------------------------------
# Host-side fold: depends only on adjacency / weights / eps (no data).
# ----------------------------------------------------------------------------
def fold_fagcn_operator(adj, w, b, *, eps=0.3, order=2):
    """Returns BigW (O*V, C*V) and bias (O*V, 1), both f32."""
    v = adj.shape[0]
    o, cin = w.shape
    c = cin // (2 * order)
    f32 = jnp.float32
    hp = jax.lax.Precision.HIGHEST

    eye = jnp.eye(v, dtype=f32)
    mats = []
    for a in (eps * eye + adj.astype(f32), eps * eye - adj.astype(f32)):
        p = a                                   # matches torch concat order [L..., H...]
        mats.append(p)
        for _ in range(2, order + 1):
            p = jnp.matmul(p, a, precision=hp)
            mats.append(p)
    mats = jnp.stack(mats)                      # (2*order, V, V)

    # (O, 2*order*C) -> (2*order, O, C): block k is the k-th concatenated group.
    w_blocks = w.astype(f32).reshape(o, 2 * order, c).transpose(1, 0, 2)
    # BigW[(o,v),(c,u)] = sum_k Wk[o,c] * mats_k[u,v]
    big_w = jnp.einsum('koc,kuv->ovcu', w_blocks, mats,
                       precision=hp).reshape(o * v, c * v)
    bias = jnp.repeat(b.astype(f32), v).reshape(o * v, 1)
    return big_w, bias


# ----------------------------------------------------------------------------
# Lane-dense entry point: x as (C*V, M) -> out (O*V, M).  Producers/consumers
# that can plumb this layout avoid all host-side transposes.
# ----------------------------------------------------------------------------
def fagcn_apply_folded(xt, big_w, bias, *, tile_m=4096,
                       compute_dtype=jnp.bfloat16, out_dtype=jnp.float32):
    cv, m = xt.shape
    ov = big_w.shape[0]
    assert big_w.shape == (ov, cv) and bias.shape == (ov, 1)

    # Tile geometry:
    #  - pad M only to 128-lane granularity (not to tile_m),
    #  - balanced tiles: tm = ceil(nblocks/nt)*128 <= tile_m,
    #  - never collapse the grid below 2 (even) tiles when >= 2 lane-blocks
    #    exist, so both v7x TensorCores get fed.
    nblocks = _ceil_div(m, 128)
    target_bpt = max(tile_m // 128, 1)
    nt = _ceil_div(nblocks, target_bpt)
    if nblocks >= 2:
        nt = max(nt, 2)
        if nt % 2 == 1 and nt < nblocks:
            nt += 1
    nt = min(nt, nblocks)
    bpt = _ceil_div(nblocks, nt)
    tm = bpt * 128
    m_pad = nt * tm

    xt = xt.astype(compute_dtype)
    if m_pad != m:
        xt = jnp.pad(xt, ((0, 0), (0, m_pad - m)))
    big_w = big_w.astype(compute_dtype)     # fold stays f32; only operands cast
    bias = bias.astype(jnp.float32)

    out = pl.pallas_call(
        fagcn_kernel,
        out_shape=jax.ShapeDtypeStruct((ov, m_pad), out_dtype),
        grid_spec=pltpu.PrefetchScalarGridSpec(
            num_scalar_prefetch=0,
            grid=(nt,),
            in_specs=[
                pl.BlockSpec((cv, tm), lambda i: (0, i)),      # x tile
                pl.BlockSpec((ov, cv), lambda i: (0, 0)),      # BigW (resident)
                pl.BlockSpec((ov, 1), lambda i: (0, 0)),       # bias (resident)
            ],
            out_specs=pl.BlockSpec((ov, tm), lambda i: (0, i)),
        ),
        compiler_params=pltpu.CompilerParams(
            dimension_semantics=("parallel",),
            vmem_limit_bytes=32 * 1024 * 1024,
        ),
    )(xt, big_w, bias)
    return out[:, :m]


# ----------------------------------------------------------------------------
# Drop-in NCVL wrapper (matches the torch module interface).
# ----------------------------------------------------------------------------
def fagcn_forward(x, adj, w, b, *, eps=0.3, order=2, tile_m=4096,
                  compute_dtype=jnp.bfloat16, out_dtype=None):
    """x: (N, C, V, L), adj: (V, V), w: (O, 2*order*C), b: (O,) -> (N, O, V, L)."""
    n, c, v, l = x.shape
    o = w.shape[0]
    assert w.shape == (o, 2 * order * c)

    big_w, bias = fold_fagcn_operator(adj, w, b, eps=eps, order=order)

    # TODO(synk): plumb the lane-dense (C*V, N*L) layout from the producer and
    # hand (O*V, N*L) to the consumer (use fagcn_apply_folded directly); these
    # two host-side layout passes are the largest remaining HBM cost around a
    # memory-bound kernel.
    xt = jnp.transpose(x, (1, 2, 0, 3)).reshape(c * v, n * l)

    out = fagcn_apply_folded(xt, big_w, bias, tile_m=tile_m,
                             compute_dtype=compute_dtype,
                             out_dtype=out_dtype if out_dtype is not None else x.dtype)

    # (O*V, M) -> (O, V, N, L) -> (N, O, V, L); F.dropout(h, 0.0) is identity.
    return out.reshape(o, v, n, l).transpose(2, 0, 1, 3)


# ----------------------------------------------------------------------------
# Pure-JAX reference (mirrors the torch module).
# ----------------------------------------------------------------------------
def fagcn_reference(x, adj, w, b, *, eps=0.3, order=2):
    v = adj.shape[0]
    eye = jnp.eye(v, dtype=x.dtype)
    hp = jax.lax.Precision.HIGHEST
    outs = []
    for a in (eps * eye + adj, eps * eye - adj):
        x1 = jnp.einsum('ncvl,vw->ncwl', x, a, precision=hp)
        outs.append(x1)
        for _ in range(2, order + 1):
            x2 = jnp.einsum('ncvl,vw->ncwl', x1, a, precision=hp)
            outs.append(x2)
            x1 = x2
    h = jnp.concatenate(outs, axis=1)
    return (jnp.einsum('nivl,oi->novl', h, w, precision=hp)
            + b[None, :, None, None])


if __name__ == "__main__":
    N, C, V, L_SEQ = 2, 4, 16, 8
    ORDER, EPS = 2, 0.3
    C_OUT = 8
    C_IN_MLP = 2 * ORDER * C

    key = jax.random.PRNGKey(0)
    k_x, k_adj, k_w, k_b = jax.random.split(key, 4)
    x = jax.random.normal(k_x, (N, C, V, L_SEQ), jnp.float32)
    adj = jax.random.normal(k_adj, (V, V), jnp.float32)

    # Deterministic Conv2d(1x1)-style init: U(-1/sqrt(fan_in), 1/sqrt(fan_in))
    bound = 1.0 / math.sqrt(C_IN_MLP)
    w = jax.random.uniform(k_w, (C_OUT, C_IN_MLP), jnp.float32, -bound, bound)
    b = jax.random.uniform(k_b, (C_OUT,), jnp.float32, -bound, bound)

    ref = fagcn_reference(x, adj, w, b, eps=EPS, order=ORDER)

    # Strict-semantics path (f32 operands).
    out_f32 = fagcn_forward(x, adj, w, b, eps=EPS, order=ORDER,
                            compute_dtype=jnp.float32)
    jax.block_until_ready(out_f32)
    assert out_f32.shape == (N, C_OUT, V, L_SEQ)
    assert jnp.allclose(out_f32, ref, atol=2e-4, rtol=2e-4), "f32 mismatch"

    # Default fast path (bf16 operands, f32 accumulation) — looser tolerance.
    out_bf = fagcn_forward(x, adj, w, b, eps=EPS, order=ORDER)
    jax.block_until_ready(out_bf)
    assert out_bf.shape == (N, C_OUT, V, L_SEQ)
    rel = float(jnp.max(jnp.abs(out_bf - ref)) / (jnp.max(jnp.abs(ref)) + 1e-6))
    assert rel < 2.5e-2, f"bf16 path relative error too large: {rel}"

    print("KERNEL_OK")
</pallas_src>

<mosaic_0001>
module attributes {stable_mosaic.version = 11 : i64} {
  func.func @fagcn_kernel(%arg0: i32, %arg1: memref<64x128xf32, #tpu.memory_space<vmem>>, %arg2: memref<128x64xf32, #tpu.memory_space<vmem>>, %arg3: memref<128x1xf32, #tpu.memory_space<vmem>>, %arg4: memref<128x128xf32, #tpu.memory_space<vmem>>) attributes {dimension_semantics = [#tpu.dimension_semantics<parallel>], iteration_bounds = array<i64: 1>, scalar_prefetch = 0 : i64, scratch_operands = 0 : i64, tpu.core_type = #tpu.core_type<tc>, window_params = [{transform_indices = @transform_0, window_bounds = array<i64: 64, 128>}, {pipeline_mode = #tpu.pipeline_mode<synchronous>, transform_indices = @transform_1, window_bounds = array<i64: 128, 64>}, {pipeline_mode = #tpu.pipeline_mode<synchronous>, transform_indices = @transform_2, window_bounds = array<i64: 128, 1>}, {transform_indices = @transform_3, window_bounds = array<i64: 128, 128>}]} {
    %c0 = arith.constant 0 : index
    %c0_0 = arith.constant 0 : index
    %0 = vector.load %arg2[%c0, %c0_0] : memref<128x64xf32, #tpu.memory_space<vmem>>, vector<128x64xf32>
    %c0_1 = arith.constant 0 : index
    %c0_2 = arith.constant 0 : index
    %1 = vector.load %arg1[%c0_1, %c0_2] : memref<64x128xf32, #tpu.memory_space<vmem>>, vector<64x128xf32>
    %cst = arith.constant dense<0.000000e+00> : vector<128x128xf32>
    %2 = tpu.matmul %0, %1, %cst {dimension_numbers = #tpu.dot_dimension_numbers<[1], [0], [0], [1], [0, 0, 1, 1], [], []>} : vector<128x64xf32>, vector<64x128xf32>, vector<128x128xf32> -> vector<128x128xf32>
    %c0_3 = arith.constant 0 : index
    %c0_4 = arith.constant 0 : index
    %3 = vector.load %arg3[%c0_3, %c0_4] : memref<128x1xf32, #tpu.memory_space<vmem>>, vector<128x1xf32>
    %4 = vector.broadcast %3 : vector<128x1xf32> to vector<128x128xf32>
    %5 = arith.addf %2, %4 : vector<128x128xf32>
    %c0_5 = arith.constant 0 : index
    %c0_6 = arith.constant 0 : index
    %6 = vector.load %arg4[%c0_5, %c0_6] : memref<128x128xf32, #tpu.memory_space<vmem>>, vector<128x128xf32>
    tpu.vector_store %arg4[%c0_5, %c0_6], %5 {strides = array<i32>} : memref<128x128xf32, #tpu.memory_space<vmem>>, vector<128x128xf32>,
    return
  }
  func.func @transform_0(%arg0: i32) -> (i32, i32) {
    %c0_i32 = arith.constant 0 : i32
    %c0_i32_0 = arith.constant 0 : i32
    return %c0_i32, %arg0 : i32, i32
  }
  func.func @transform_1(%arg0: i32) -> (i32, i32) {
    %c0_i32 = arith.constant 0 : i32
    %c0_i32_0 = arith.constant 0 : i32
    %c0_i32_1 = arith.constant 0 : i32
    return %c0_i32, %c0_i32_0 : i32, i32
  }
  func.func @transform_2(%arg0: i32) -> (i32, i32) {
    %c0_i32 = arith.constant 0 : i32
    %c0_i32_0 = arith.constant 0 : i32
    %c0_i32_1 = arith.constant 0 : i32
    return %c0_i32, %c0_i32_0 : i32, i32
  }
  func.func @transform_3(%arg0: i32) -> (i32, i32) {
    %c0_i32 = arith.constant 0 : i32
    %c0_i32_0 = arith.constant 0 : i32
    return %c0_i32, %arg0 : i32, i32
  }
}

</mosaic_0001>

<bundles_post_ra>
// kernel: tpu_custom_call.1
= control target key start
LH: loop header
LB: loop body
LE: loop exit
PB: predicated region body
PF: predicated region fallthrough
CT: control target
= control target key end

     0   :  { %s648_s0 = inlined_call_operand.vmem [shape: f32[64,128], index: 0, kind: input, shape index: {}]   ;;  %s649_s1 = inlined_call_operand.vmem [shape: f32[128,64], index: 1, kind: input, shape index: {}]   ;;  %s650_s2 = inlined_call_operand.vmem [shape: f32[128,1], index: 2, kind: input, shape index: {}]   ;;  %s651_s3 = inlined_call_operand.hbm [shape: f32[128,128], index: 3, kind: output, shape index: {}]  }
   0x1   :  { %v38_v0 = vld [vmem:[%s648_s0 + $0x38] sm:$0xff]  ;;  %v37_v1 = vld [vmem:[%s648_s0 + $0x30] sm:$0xff]  ;;  %v36_v2 = vld [vmem:[%s648_s0 + $0x28] sm:$0xff] }
   0x2   :  { %401 = vmatprep.subr.mxu0 %v38_v0  ;;  %441 = vmatprep.subr.mxu1 %v38_v0  ;;  %v35_v3 = vld [vmem:[%s648_s0 + $0x20] sm:$0xff]  ;;  %v34_v4 = vld [vmem:[%s648_s0 + $0x18] sm:$0xff]  ;;  %v33_v5 = vld [vmem:[%s648_s0 + $0x10] sm:$0xff] }
   0x3   :  { %402 = vmatpush3.msra.mxu0 %v38_v0  ;;  %449 = vmatpush3.msra.mxu1 %v38_v0  ;;  %v32_v6 = vld [vmem:[%s648_s0 + $0x8] sm:$0xff]  ;;  %v31_v7 = vld [vmem:[%s648_s0] sm:$0xff] }
   0x4   :  { %403 = vmatprep.subr.mxu0 %v37_v1  ;;  %442 = vmatprep.subr.mxu1 %v37_v1 }
   0x5   :  { %404 = vmatpush3.msra.mxu0 %v37_v1  ;;  %450 = vmatpush3.msra.mxu1 %v37_v1 }
   0x6   :  { %405 = vmatprep.subr.mxu0 %v36_v2  ;;  %443 = vmatprep.subr.mxu1 %v36_v2 }
   0x7   :  { %406 = vmatpush3.msra.mxu0 %v36_v2  ;;  %451 = vmatpush3.msra.mxu1 %v36_v2 }
   0x8   :  { %407 = vmatprep.subr.mxu0 %v35_v3  ;;  %444 = vmatprep.subr.mxu1 %v35_v3 }
   0x9   :  { %408 = vmatpush3.msra.mxu0 %v35_v3  ;;  %452 = vmatpush3.msra.mxu1 %v35_v3 }
   0xa   :  { %409 = vmatprep.subr.mxu0 %v34_v4  ;;  %445 = vmatprep.subr.mxu1 %v34_v4 }
   0xb   :  { %410 = vmatpush3.msra.mxu0 %v34_v4  ;;  %453 = vmatpush3.msra.mxu1 %v34_v4 }
   0xc   :  { %411 = vmatprep.subr.mxu0 %v33_v5  ;;  %446 = vmatprep.subr.mxu1 %v33_v5 }
   0xd   :  { %412 = vmatpush3.msra.mxu0 %v33_v5  ;;  %454 = vmatpush3.msra.mxu1 %v33_v5 }
   0xe   :  { %413 = vmatprep.subr.mxu0 %v32_v6  ;;  %447 = vmatprep.subr.mxu1 %v32_v6 }
   0xf   :  { %8 = vsyncpa [#allocation3], 0  ;;  %414 = vmatpush3.msra.mxu0 %v32_v6  ;;  %455 = vmatpush3.msra.mxu1 %v32_v6  ;;  %v15_v8 = vld [vmem:[%s649_s1] sm:$0xff]  ;;  %vm135_vm0 = vcmask 523264   ;;  %v16_v10 = vld [vmem:[%s649_s1 + $0x8] sm:$0xff]  ;;  %v485_v20 = vmov 0  }
  0x10   :  { %v23_v9 = vld [vmem:[%s649_s1 + $0x40] sm:$0xff]  ;;  %415 = vmatprep.subr.mxu0 %v31_v7  ;;  %448 = vmatprep.subr.mxu1 %v31_v7  ;;  %v24_v11 = vld [vmem:[%s649_s1 + $0x48] sm:$0xff]  ;;  %v17_v12 = vld [vmem:[%s649_s1 + $0x10] sm:$0xff] }
  0x11   :  { %416 = vmatpush3.msra.mxu0 %v31_v7  ;;  %456 = vmatpush3.msra.mxu1 %v31_v7  ;;  %v25_v13 = vld [vmem:[%s649_s1 + $0x50] sm:$0xff]  ;;  %v39_v15 = vld [vmem:[%s650_s2] sm:$0xff]  ;;  %v18_v16 = vld [vmem:[%s649_s1 + $0x18] sm:$0xff] }
  0x12   :  { %417 = vmatprep.mubr.msk.f32.mxu0 %vm135_vm0, %v15_v8  ;;  %429 = vmatprep.mubr.msk.f32.mxu1 %vm135_vm0, %v23_v9  ;;  %v41_v14 = vld [vmem:[%s650_s2 + $0x10] sm:$0xff]  ;;  %v26_v17 = vld [vmem:[%s649_s1 + $0x58] sm:$0xff]  ;;  %v19_v18 = vld [vmem:[%s649_s1 + $0x20] sm:$0xff] }
  0x13   :  { %418 = vmatmul.mubr.msk.f32.vlgmr.msra.gmra.mxu0 %vm135_vm0, %v16_v10  ;;  %430 = vmatmul.mubr.msk.f32.vlgmr.msra.gmra.mxu1 %vm135_vm0, %v24_v11  ;;  %v27_v19 = vld [vmem:[%s649_s1 + $0x60] sm:$0xff]  ;;  %v42_v21 = vld [vmem:[%s650_s2 + $0x18] sm:$0xff]  ;;  %v40_v22 = vld [vmem:[%s650_s2 + $0x8] sm:$0xff] }
  0x14   :  { %420 = vmatprep.mubr.msk.f32.mxu0 %vm135_vm0, %v17_v12  ;;  %432 = vmatprep.mubr.msk.f32.mxu1 %vm135_vm0, %v25_v13  ;;  %v20_v23 = vld [vmem:[%s649_s1 + $0x28] sm:$0xff]  ;;  %v21_v25 = vld [vmem:[%s649_s1 + $0x30] sm:$0xff]  ;;  %v43_v28 = vld [vmem:[%s650_s2 + $0x20] sm:$0xff] }
  0x15   :  { %462 = vset.pattern.permute.xlu1 %v485_v20  ;;  %461 = vset.pattern.permute.xlu0 %v485_v20  ;;  %v28_v24 = vld [vmem:[%s649_s1 + $0x68] sm:$0xff]  ;;  %v29_v26 = vld [vmem:[%s649_s1 + $0x70] sm:$0xff]  ;;  %v22_v29 = vld [vmem:[%s649_s1 + $0x38] sm:$0xff] }
  0x16   :  { %67 = vperm.xlu1 %462, %v41_v14   ;;  %57 = vperm.xlu0 %461, %v39_v15   ;;  %v44_v27 = vld [vmem:[%s650_s2 + $0x28] sm:$0xff]  ;;  %v30_v30 = vld [vmem:[%s649_s1 + $0x78] sm:$0xff]  ;;  %v45_v32 = vld [vmem:[%s650_s2 + $0x30] sm:$0xff] }
  0x17   :  { %421 = vmatmul.mubr.msk.f32.gmra.mxu0 %vm135_vm0, %v18_v16  ;;  %433 = vmatmul.mubr.msk.f32.gmra.mxu1 %vm135_vm0, %v26_v17  ;;  %v46_v31 = vld [vmem:[%s650_s2 + $0x38] sm:$0xff]  ;;  %v48_v33 = vld [vmem:[%s650_s2 + $0x48] sm:$0xff]  ;;  %v47_v34 = vld [vmem:[%s650_s2 + $0x40] sm:$0xff] }
  0x18   :  { %423 = vmatprep.mubr.msk.f32.mxu0 %vm135_vm0, %v19_v18  ;;  %435 = vmatprep.mubr.msk.f32.mxu1 %vm135_vm0, %v27_v19  ;;  %v50_v35 = vld [vmem:[%s650_s2 + $0x58] sm:$0xff]  ;;  %v49_v36 = vld [vmem:[%s650_s2 + $0x50] sm:$0xff]  ;;  %v52_v37 = vld [vmem:[%s650_s2 + $0x68] sm:$0xff] }
  0x19   :  { %v51_v38 = vld [vmem:[%s650_s2 + $0x60] sm:$0xff]  ;;  %v54_v39 = vld [vmem:[%s650_s2 + $0x78] sm:$0xff]  ;;  %v53_v40 = vld [vmem:[%s650_s2 + $0x70] sm:$0xff]  ;;  %s486_s2 = smov [#allocation2]  }
  0x1a   :  { %72 = vperm.xlu1 %462, %v42_v21   ;;  %62 = vperm.xlu0 %461, %v40_v22   ;;  %s350_s7 = sshll.u32 %s486_s2, 4  ;;  %s351_s7 = int_to_ptr.vmem [resolvable:$true] %s350_s7 }
  0x1b   :  { %424 = vmatmul.mubr.msk.f32.gmra.mxu0 %vm135_vm0, %v20_v23  ;;  %436 = vmatmul.mubr.msk.f32.gmra.mxu1 %vm135_vm0, %v28_v24  ;;  %s463_s8 = scalar_lea.vmem %s351_s7, 2048  ;;  %p468_p1 = scmp.lt.s32.totalorder %s351_s7, %s351_s7 }
  0x1c   :  { %426 = vmatprep.mubr.msk.f32.mxu0 %vm135_vm0, %v21_v25  ;;  %438 = vmatprep.mubr.msk.f32.mxu1 %vm135_vm0, %v29_v26  ;;  %p464_p0 = scmp.ne.s32.totalorder %s351_s7, %s463_s8  ;;  %p469_p2 = scmp.lt.s32.totalorder %s463_s8, %s463_s8 }
  0x1e   :  { %82 = vperm.xlu1 %462, %v44_v27   ;;  %77 = vperm.xlu0 %461, %v43_v28   ;;  %p470_p3 = por %p469_p2, %p468_p1 }
  0x1f   :  { %427 = vmatmul.mubr.msk.f32.gmra.mxu0 %vm135_vm0, %v22_v29  ;;  %439 = vmatmul.mubr.msk.f32.gmra.mxu1 %vm135_vm0, %v30_v30 }
  0x20   :  { %p471_p4 = pnand %p470_p3, %p464_p0 }
  0x22   :  { %92 = vperm.xlu1 %462, %v46_v31   ;;  %87 = vperm.xlu0 %461, %v45_v32  }
  0x26   :  { %102 = vperm.xlu1 %462, %v48_v33   ;;  %97 = vperm.xlu0 %461, %v47_v34  }
  0x2a   :  { %112 = vperm.xlu1 %462, %v50_v35   ;;  %107 = vperm.xlu0 %461, %v49_v36  }
  0x2e   :  { %122 = vperm.xlu1 %462, %v52_v37   ;;  %117 = vperm.xlu0 %461, %v51_v38  }
  0x32   :  { %132 = vperm.xlu1 %462, %v54_v39   ;;  %127 = vperm.xlu0 %461, %v53_v40  }
  0x91   :  { %v68_v41 = vpop.permute.xlu1 %67  ;;  %v58_v42 = vpop.permute.xlu0 %57 }
  0x95   :  { %v73_v43 = vpop.permute.xlu1 %72  ;;  %v63_v44 = vpop.permute.xlu0 %62 }
  0x99   :  { %v83_v45 = vpop.permute.xlu1 %82  ;;  %v78_v46 = vpop.permute.xlu0 %77 }
  0x9d   :  { %v93_v47 = vpop.permute.xlu1 %92  ;;  %v88_v48 = vpop.permute.xlu0 %87 }
  0xa1   :  { %v103_v49 = vpop.permute.xlu1 %102  ;;  %v98_v50 = vpop.permute.xlu0 %97 }
  0xa5   :  { %v113_v51 = vpop.permute.xlu1 %112  ;;  %v108_v54 = vpop.permute.xlu0 %107 }
  0xa9   :  { %v123_v63 = vpop.permute.xlu1 %122  ;;  %v118_v4 = vpop.permute.xlu0 %117 }
  0xad   :  { %v133_v13 = vpop.permute.xlu1 %132  ;;  %v128_v18 = vpop.permute.xlu0 %127 }
  0xd3   :  { %v419_v52 = vpop.f32.mrf.mxu0  ;;  %v431_v53 = vpop.f32.mrf.mxu1 }
  0xd4   :  { %v256_v55 = vadd.f32 %v419_v52, %v63_v44  ;;  %v296_v56 = vadd.f32 %v431_v53, %v103_v49 }
  0xd5   :  { %v250_v57 = vpop.f32.mrf.mxu0  ;;  %v290_v58 = vpop.f32.mrf.mxu1 }
  0xd6   :  { %330 = vst [vmem:[#allocation2 + $0x8] sm:$0xff] %v256_v55  ;;  %338 = vst [vmem:[#allocation2 + $0x48] sm:$0xff] %v296_v56  ;;  %v251_v59 = vadd.f32 %v250_v57, %v58_v42  ;;  %v291_v60 = vadd.f32 %v290_v58, %v98_v50 }
  0xd7   :  { %v422_v61 = vpop.f32.mrf.mxu0  ;;  %v434_v62 = vpop.f32.mrf.mxu1 }
  0xd8   :  { %329 = vst [vmem:[#allocation2] sm:$0xff] %v251_v59  ;;  %337 = vst [vmem:[#allocation2 + $0x40] sm:$0xff] %v291_v60  ;;  %v266_v0 = vadd.f32 %v422_v61, %v73_v43  ;;  %v306_v1 = vadd.f32 %v434_v62, %v113_v51 }
  0xd9   :  { %v260_v2 = vpop.f32.mrf.mxu0  ;;  %v300_v3 = vpop.f32.mrf.mxu1 }
  0xda   :  { %332 = vst [vmem:[#allocation2 + $0x18] sm:$0xff] %v266_v0  ;;  %340 = vst [vmem:[#allocation2 + $0x58] sm:$0xff] %v306_v1  ;;  %v261_v5 = vadd.f32 %v260_v2, %v68_v41  ;;  %v301_v6 = vadd.f32 %v300_v3, %v108_v54 }
  0xdb   :  { %v425_v7 = vpop.f32.mrf.mxu0  ;;  %v437_v8 = vpop.f32.mrf.mxu1 }
  0xdc   :  { %331 = vst [vmem:[#allocation2 + $0x10] sm:$0xff] %v261_v5  ;;  %339 = vst [vmem:[#allocation2 + $0x50] sm:$0xff] %v301_v6  ;;  %v276_v9 = vadd.f32 %v425_v7, %v83_v45  ;;  %v316_v10 = vadd.f32 %v437_v8, %v123_v63 }
  0xdd   :  { %v270_v11 = vpop.f32.mrf.mxu0  ;;  %v310_v12 = vpop.f32.mrf.mxu1 }
  0xde   :  { %334 = vst [vmem:[#allocation2 + $0x28] sm:$0xff] %v276_v9  ;;  %342 = vst [vmem:[#allocation2 + $0x68] sm:$0xff] %v316_v10  ;;  %v271_v14 = vadd.f32 %v270_v11, %v78_v46  ;;  %v311_v15 = vadd.f32 %v310_v12, %v118_v4 }
  0xdf   :  { %v428_v16 = vpop.f32.mrf.mxu0  ;;  %v440_v17 = vpop.f32.mrf.mxu1 }
  0xe0   :  { %333 = vst [vmem:[#allocation2 + $0x20] sm:$0xff] %v271_v14  ;;  %341 = vst [vmem:[#allocation2 + $0x60] sm:$0xff] %v311_v15  ;;  %v286_v19 = vadd.f32 %v428_v16, %v93_v47  ;;  %v326_v20 = vadd.f32 %v440_v17, %v133_v13 }
  0xe1   :  { %v280_v21 = vpop.f32.mrf.mxu0  ;;  %v320_v22 = vpop.f32.mrf.mxu1 }
  0xe2   :  { %336 = vst [vmem:[#allocation2 + $0x38] sm:$0xff] %v286_v19  ;;  %344 = vst [vmem:[#allocation2 + $0x78] sm:$0xff] %v326_v20  ;;  %v281_v23 = vadd.f32 %v280_v21, %v88_v48  ;;  %v321_v24 = vadd.f32 %v320_v22, %v128_v18 }
  0xe4   :  { %335 = vst [vmem:[#allocation2 + $0x30] sm:$0xff] %v281_v23  ;;  %343 = vst [vmem:[#allocation2 + $0x70] sm:$0xff] %v321_v24 }
  0xe5   :  { %474 = shalt.err (!%p471_p4)
}
  0xe6   :  { %s487_s9 = smov 128   ;;  %s488_s10 = smov 8  }
  0xe7   :  { %356 = dma.vmem_to_hbm [thread:$0]  %s351_s7, 2048, %s651_s3, [#allocation3], %s487_s9, %s487_s9, %s488_s10  }
  0xe8   :  { %483 = dma.done.wait [#allocation3], 2048  }
  0xe9   :  { %484 = vsyncadd [#allocation3], 4294965248 }
  0xea   :  { %360 = vsyncpa [#allocation3], 1 }

</bundles_post_ra>
